<compile_context>
chip_gen: v5e
topology: v5e:2x2
jax: 0.10.0
libtpu: 0.0.40
codegen_flags: <defaults>
</compile_context>

<pallas_src>
import functools

import jax
import jax.numpy as jnp
from jax.experimental import pallas as pl
from jax.experimental.pallas import tpu as pltpu


def _se_kernel(x_ref, w1t_ref, w2t_ref, o_ref, *, inv_hw):
    # x_ref   : (Bt, C, HWp)  batch-tile of the input, native dtype
    # w1t_ref : (C, Crp)      fc1 weight, transposed, zero-padded columns
    # w2t_ref : (Crp, C)      fc2 weight, transposed, zero-padded rows
    x = x_ref[...]                                            # native dtype

    # Squeeze: global average pool over the (possibly padded) spatial axis.
    # Accumulate in f32; any padded spatial columns are zero so the sum is
    # exact, and we divide by the true H*W (inv_hw), not the padded width.
    y = jnp.sum(x.astype(jnp.float32), axis=-1) * inv_hw      # (Bt, C) f32

    # Excitation, batched over Bt so the MXU sees a real matmul.
    # FC1 + ReLU: (Bt, C) @ (C, Crp) -> (Bt, Crp).
    h = jnp.dot(y, w1t_ref[...].astype(jnp.float32),
                preferred_element_type=jnp.float32)
    h = jnp.maximum(h, 0.0)

    # FC2 + Sigmoid: (Bt, Crp) @ (Crp, C) -> (Bt, C).  Sigmoid runs on the EUP.
    s = jnp.dot(h, w2t_ref[...].astype(jnp.float32),
                preferred_element_type=jnp.float32)
    s = jax.nn.sigmoid(s)

    # Scale: x * s broadcast over spatial.  Cast s *down* to the input dtype
    # (tiny (Bt, C) tensor) so the dominant elementwise path stays narrow.
    o_ref[...] = (x * s.astype(x.dtype)[:, :, None]).astype(o_ref.dtype)


def se_block(x_nchw, w1, w2):
    """SEBlock forward.  x_nchw: (B, C, H, W); w1: (C//r, C); w2: (C, C//r)."""
    B, C, H, W = x_nchw.shape
    HW = H * W
    Cr = w1.shape[0]
    dtype = x_nchw.dtype
    itemsize = jnp.dtype(dtype).itemsize

    # Spatial (lane) axis: pad H*W up to a multiple of 128 only when the
    # relative byte overhead is small; this kernel is HBM-bandwidth bound,
    # so heavy zero-padding would cost more than masked partial stores.
    HWp = pl.cdiv(HW, 128) * 128
    if HW != HWp and (HWp - HW) * 4 > HW:      # > 25% extra bytes -> skip pad
        HWp = HW
    # Sublane-aligned squeeze dim (C//ratio is typically 4..128).
    Crp = max(8, pl.cdiv(Cr, 8) * 8)

    # Batch-tile size from an explicit VMEM budget: per step we hold the input
    # and output blocks double-buffered plus one f32 temp inside the body.
    per_elem_in_out = 4 * C * HWp * itemsize       # 2 bufs x (in + out)
    per_elem_scratch = C * HWp * 4                 # f32 temp for the pool
    budget = 24 * 1024 * 1024                      # conservative for v7x (64 MiB)
    max_bt = max(1, budget // (per_elem_in_out + per_elem_scratch))
    bt = min(B, max_bt)
    if B >= 2:
        # Keep >= 2 grid steps so v7x's two TensorCores both get batch work;
        # on v5e/v6e the extra grid step costs ~0.35 us and is negligible.
        bt = min(bt, pl.cdiv(B, 2))
    grid_b = pl.cdiv(B, bt)
    Bp = grid_b * bt

    # Flatten spatial, pad batch/spatial as needed.  Zero padding is exact:
    # zero batch rows are sliced away, zero spatial columns do not perturb
    # the average since we divide by the true HW.
    x = x_nchw.reshape(B, C, HW)
    if (Bp, HWp) != (B, HW):
        x = jnp.pad(x, ((0, Bp - B), (0, 0), (0, HWp - HW)))

    # Pad the squeeze dim of the weights to Crp and pre-transpose so the
    # kernel runs plain row-major matmuls.  Zero padding keeps results exact
    # (extra h columns are relu(0)=0 and the matching w2 rows are 0).
    w1p = jnp.pad(w1, ((0, Crp - Cr), (0, 0))) if Crp != Cr else w1
    w2p = jnp.pad(w2, ((0, 0), (0, Crp - Cr))) if Crp != Cr else w2
    w1t = w1p.T                                    # (C, Crp)
    w2t = w2p.T                                    # (Crp, C)

    # Explicit VMEM limit with headroom, capped below v7x's 64 MiB physical.
    weight_bytes = 2 * (w1t.size + w2t.size) * jnp.dtype(w1t.dtype).itemsize
    need = bt * (per_elem_in_out + per_elem_scratch) + weight_bytes
    vmem_limit = int(min(56 * 1024 * 1024, max(need + (8 << 20), 16 << 20)))

    kernel = functools.partial(_se_kernel, inv_hw=1.0 / float(HW))

    out = pl.pallas_call(
        kernel,
        out_shape=jax.ShapeDtypeStruct((Bp, C, HWp), dtype),
        grid_spec=pltpu.PrefetchScalarGridSpec(
            num_scalar_prefetch=0,
            grid=(grid_b,),
            in_specs=[
                pl.BlockSpec((bt, C, HWp), lambda b: (b, 0, 0)),
                pl.BlockSpec((C, Crp), lambda b: (0, 0)),   # weights: constant
                pl.BlockSpec((Crp, C), lambda b: (0, 0)),   # index -> DMA'd once
            ],
            out_specs=pl.BlockSpec((bt, C, HWp), lambda b: (b, 0, 0)),
        ),
        compiler_params=pltpu.CompilerParams(
            dimension_semantics=("parallel",),
            vmem_limit_bytes=vmem_limit,
        ),
    )(x, w1t, w2t)

    return out[:B, :, :HW].reshape(B, C, H, W)


def se_block_ref(x, w1, w2):
    """Pure-JAX reference matching the PyTorch forward."""
    y = jnp.mean(x.astype(jnp.float32), axis=(2, 3))   # (B, C)
    y = jnp.maximum(y @ w1.T.astype(jnp.float32), 0.0) # (B, C//r)
    y = jax.nn.sigmoid(y @ w2.T.astype(jnp.float32))   # (B, C)
    return x * y.astype(x.dtype)[:, :, None, None]


if __name__ == "__main__":
    key = jax.random.PRNGKey(0)

    # Case 1: inchannel=64, ratio=16, 16x16 spatial (HW=256, lane-dense path).
    B, C, H, W = 2, 64, 16, 16
    Cr = C // 16
    kx, k1, k2 = jax.random.split(key, 3)
    x = jax.random.normal(kx, (B, C, H, W), dtype=jnp.float32)
    w1 = jax.random.normal(k1, (Cr, C), dtype=jnp.float32) * (1.0 / C ** 0.5)
    w2 = jax.random.normal(k2, (C, Cr), dtype=jnp.float32) * (1.0 / Cr ** 0.5)
    out = se_block(x, w1, w2)
    jax.block_until_ready(out)
    ref = se_block_ref(x, w1, w2)
    assert out.shape == (B, C, H, W)
    assert jnp.allclose(out, ref, atol=1e-5, rtol=1e-5), "case1 mismatch"

    # Case 2: inchannel=32, ratio=8, 7x7 spatial (HW=49, unpadded-lane path).
    B2, C2, H2, W2 = 4, 32, 7, 7
    Cr2 = C2 // 8
    kx2, k12, k22 = jax.random.split(jax.random.PRNGKey(1), 3)
    x2 = jax.random.normal(kx2, (B2, C2, H2, W2), dtype=jnp.float32)
    w12 = jax.random.normal(k12, (Cr2, C2), dtype=jnp.float32) * (1.0 / C2 ** 0.5)
    w22 = jax.random.normal(k22, (C2, Cr2), dtype=jnp.float32) * (1.0 / Cr2 ** 0.5)
    out2 = se_block(x2, w12, w22)
    jax.block_until_ready(out2)
    ref2 = se_block_ref(x2, w12, w22)
    assert out2.shape == (B2, C2, H2, W2)
    assert jnp.allclose(out2, ref2, atol=1e-5, rtol=1e-5), "case2 mismatch"

    print("KERNEL_OK")
</pallas_src>

<mosaic_0001>
module attributes {stable_mosaic.version = 11 : i64} {
  func.func @_se_kernel(%arg0: i32, %arg1: memref<1x64x256xf32, #tpu.memory_space<vmem>>, %arg2: memref<64x8xf32, #tpu.memory_space<vmem>>, %arg3: memref<8x64xf32, #tpu.memory_space<vmem>>, %arg4: memref<1x64x256xf32, #tpu.memory_space<vmem>>) attributes {dimension_semantics = [#tpu.dimension_semantics<parallel>], iteration_bounds = array<i64: 2>, scalar_prefetch = 0 : i64, scratch_operands = 0 : i64, tpu.core_type = #tpu.core_type<tc>, window_params = [{transform_indices = @transform_0, window_bounds = array<i64: 1, 64, 256>}, {pipeline_mode = #tpu.pipeline_mode<synchronous>, transform_indices = @transform_1, window_bounds = array<i64: 64, 8>}, {pipeline_mode = #tpu.pipeline_mode<synchronous>, transform_indices = @transform_2, window_bounds = array<i64: 8, 64>}, {transform_indices = @transform_3, window_bounds = array<i64: 1, 64, 256>}]} {
    %c0 = arith.constant 0 : index
    %c0_0 = arith.constant 0 : index
    %c0_1 = arith.constant 0 : index
    %0 = vector.load %arg1[%c0, %c0_0, %c0_1] : memref<1x64x256xf32, #tpu.memory_space<vmem>>, vector<1x64x256xf32>
    %cst = arith.constant dense<0.000000e+00> : vector<1x64xf32>
    %1 = vector.multi_reduction <add>, %0, %cst [2] : vector<1x64x256xf32> to vector<1x64xf32>
    %cst_2 = arith.constant 3.906250e-03 : f32
    %2 = vector.broadcast %cst_2 : f32 to vector<1x64xf32>
    %3 = arith.mulf %1, %2 : vector<1x64xf32>
    %c0_3 = arith.constant 0 : index
    %c0_4 = arith.constant 0 : index
    %4 = vector.load %arg2[%c0_3, %c0_4] : memref<64x8xf32, #tpu.memory_space<vmem>>, vector<64x8xf32>
    %cst_5 = arith.constant dense<0.000000e+00> : vector<1x8xf32>
    %5 = tpu.matmul %3, %4, %cst_5 {dimension_numbers = #tpu.dot_dimension_numbers<[1], [0], [0], [1], [0, 0, 1, 1], [], []>} : vector<1x64xf32>, vector<64x8xf32>, vector<1x8xf32> -> vector<1x8xf32>
    %cst_6 = arith.constant 0.000000e+00 : f32
    %6 = vector.broadcast %cst_6 : f32 to vector<1x8xf32>
    %7 = arith.maximumf %5, %6 : vector<1x8xf32>
    %c0_7 = arith.constant 0 : index
    %c0_8 = arith.constant 0 : index
    %8 = vector.load %arg3[%c0_7, %c0_8] : memref<8x64xf32, #tpu.memory_space<vmem>>, vector<8x64xf32>
    %cst_9 = arith.constant dense<0.000000e+00> : vector<1x64xf32>
    %9 = tpu.matmul %7, %8, %cst_9 {dimension_numbers = #tpu.dot_dimension_numbers<[1], [0], [0], [1], [0, 0, 1, 1], [], []>} : vector<1x8xf32>, vector<8x64xf32>, vector<1x64xf32> -> vector<1x64xf32>
    %10 = arith.negf %9 : vector<1x64xf32>
    %11 = math.exp %10 : vector<1x64xf32>
    %cst_10 = arith.constant 1.000000e+00 : f32
    %12 = vector.broadcast %cst_10 : f32 to vector<1x64xf32>
    %13 = arith.addf %12, %11 : vector<1x64xf32>
    %14 = arith.divf %12, %13 : vector<1x64xf32>
    %15 = vector.shape_cast %14 : vector<1x64xf32> to vector<1x64x1xf32>
    %16 = vector.broadcast %15 : vector<1x64x1xf32> to vector<1x64x256xf32>
    %17 = arith.mulf %0, %16 : vector<1x64x256xf32>
    %c0_11 = arith.constant 0 : index
    %c0_12 = arith.constant 0 : index
    %c0_13 = arith.constant 0 : index
    %18 = vector.load %arg4[%c0_11, %c0_12, %c0_13] : memref<1x64x256xf32, #tpu.memory_space<vmem>>, vector<1x64x256xf32>
    tpu.vector_store %arg4[%c0_11, %c0_12, %c0_13], %17 {strides = array<i32>} : memref<1x64x256xf32, #tpu.memory_space<vmem>>, vector<1x64x256xf32>,
    return
  }
  func.func @transform_0(%arg0: i32) -> (i32, i32, i32) {
    %c0_i32 = arith.constant 0 : i32
    %c0_i32_0 = arith.constant 0 : i32
    %c0_i32_1 = arith.constant 0 : i32
    return %arg0, %c0_i32, %c0_i32_0 : i32, i32, i32
  }
  func.func @transform_1(%arg0: i32) -> (i32, i32) {
    %c0_i32 = arith.constant 0 : i32
    %c0_i32_0 = arith.constant 0 : i32
    %c0_i32_1 = arith.constant 0 : i32
    return %c0_i32, %c0_i32_0 : i32, i32
  }
  func.func @transform_2(%arg0: i32) -> (i32, i32) {
    %c0_i32 = arith.constant 0 : i32
    %c0_i32_0 = arith.constant 0 : i32
    %c0_i32_1 = arith.constant 0 : i32
    return %c0_i32, %c0_i32_0 : i32, i32
  }
  func.func @transform_3(%arg0: i32) -> (i32, i32, i32) {
    %c0_i32 = arith.constant 0 : i32
    %c0_i32_0 = arith.constant 0 : i32
    %c0_i32_1 = arith.constant 0 : i32
    return %arg0, %c0_i32, %c0_i32_0 : i32, i32, i32
  }
}

</mosaic_0001>

<bundles_post_ra>
// kernel: tpu_custom_call.1
= control target key start
LH: loop header
LB: loop body
LE: loop exit
PB: predicated region body
PF: predicated region fallthrough
CT: control target
= control target key end

     0   :  { %8 = vsyncpa [#allocation3], 0  ;;  %s969_s0 = inlined_call_operand.hbm [shape: f32[2,64,256], index: 0, kind: input, shape index: {}]   ;;  %s970_s1 = inlined_call_operand.vmem [shape: f32[64,8], index: 1, kind: input, shape index: {}]   ;;  %s971_s2 = inlined_call_operand.vmem [shape: f32[8,64], index: 2, kind: input, shape index: {}]   ;;  %s972_s3 = inlined_call_operand.hbm [shape: f32[2,64,256], index: 3, kind: output, shape index: {}]  }
   0x1   :  { %10 = vsyncpa [#allocation3 + $0x1], 0 }
   0x2   :  { %11 = vsyncpa [#allocation4], 0 }
   0x3   :  { %13 = vsyncpa [#allocation4 + $0x1], 0  ;;  %s728_s12 = smov 0   ;;  %s730_s13 = smov 0  }
   0x4   :  { %s732_s14 = smov 0   ;;  %s734_s15 = smov 0  }
   0x5 LB: > { %s749_s16 = sadd.s32 4294967295, %s702_s15   ;;  %s524_s17 = sadd.s32 4294967294, %s702_s15   ;;  %s702_s15 = sphi %s734_s15, %s982_s15   ;;  %s698_s14 = sphi %s732_s14, %s981_s14   ;;  %s694_s13 = sphi %s730_s13, %s980_s13   ;;  %s690_s12 = sphi %s728_s12, %s979_s12  }
   0x6   : > { %s753_s18 = sadd.s32 1, %s702_s15   ;;  %s26_s19 = sadd.s32 1, %s698_s14 }
   0x7   : > { %s23_s20 = ssub.s32 %s702_s15, %s753_s18  ;;  %p33_p0 = scmp.ne.s32.totalorder %s698_s14, %s694_s13 }
   0x8   : > { %p24_p1 = scmp.eq.s32.totalorder %s23_s20, 0  ;;  %p34_p2 = scmp.eq.s32.totalorder %s702_s15, 0 }
   0x9   : > { %p39_p3 = scmp.ne.s32.totalorder %s694_s13, %s690_s12  ;;  %p40_p4 = scmp.eq.s32.totalorder %s749_s16, 0 }
   0xa   : > { %s765_s21 = scalar_select %p24_p1, %s698_s14, %s26_s19  }
   0xb   : > { %p767_p5 = por %p34_p2, %p33_p0  ;;  %p771_p6 = por %p40_p4, %p39_p3 }
   0xc   : > { %p105_p7 = scmp.eq.s32.totalorder %s749_s16, 1  ;;  %p111_p8 = scmp.eq.s32.totalorder %s524_s17, 1 }
   0xd   : > { %p555_p10 = scmp.lt.s32.totalorder %s702_s15, 2  ;;  %s137_s26 = sand.u32 1, %s698_s14  }
   0xe   : > { %p778_p11 = por %p105_p7, %p33_p0  ;;  %p782_p12 = por %p111_p8, %p39_p3 }
   0xf   : > { %s541_s27 = sshll.u32 %s702_s15, 7  ;;  %s527_s28 = sshll.u32 %s137_s26, 7 }
  0x10   : > { %s146_s4 = scalar_lea.hbm %s969_s0, %s541_s27  ;;  %s141_s6 = scalar_lea.vmem [#allocation2], %s527_s28 }
  0x11   : > { %s147_s5 = sshll.u32 %s146_s4, 4  ;;  %s149_s7 = sshll.u32 %s141_s6, 4  ;;  %s148_s5 = int_to_ptr.hbm [resolvable:$true] %s147_s5  ;;  %s150_s7 = int_to_ptr.vmem [resolvable:$true] %s149_s7 }
  0x12   : > { %p793_p13 = pnand %p555_p10, %p767_p5  ;;  %p530_p0 = scmp.ge.s32.totalorder %s702_s15, 1 }
  0x13   : > { %p157_p1 = scmp.lt.s32.totalorder %s702_s15, 3  ;;  %s138_s9 = scalar_lea.sflag [#allocation3], %s137_s26 }
  0x14   : > { %s606_s10 = sshra.s32 %s148_s5, 4  ;;  %p610_p3 = pneg %p793_p13  ;;  %s607_s10 = int_to_ptr.hbm [resolvable:$true] %s606_s10 }
  0x15   : > { %s608_s11 = scalar_lea.hbm %s607_s10, 128  ;;  %s613_s20 = scalar_lea.hbm %s969_s0, 256 }
  0x16   : > { %p609_p2 = scmp.ne.s32.totalorder %s607_s10, %s608_s11  ;;  %p614_p5 = scmp.lt.s32.totalorder %s607_s10, %s969_s0 }
  0x17   : > { %p615_p8 = scmp.lt.s32.totalorder %s613_s20, %s608_s11 }
  0x18   : > { %p611_p4 = pnand %p610_p3, %p609_p2 }
  0x19   : > { %p616_p10 = por %p615_p8, %p614_p5 }
  0x1a   : > { %p612_p7 = pneg %p611_p4 }
  0x1c   : > { %p617_p9 = pnand %p616_p10, %p612_p7 }
  0x1e   : > { %620 = shalt.err (!%p617_p9)
}
  0x1f   : > { %s704_s26 = smov 256   ;;  %s705_s28 = smov 16  }
  0x20   : > { %550 = dma.hbm_to_vmem [thread:$0]  (!%p793_p13), %s148_s5, 2048, %s150_s7, %s138_s9, %s704_s26, %s704_s26, %s705_s28  }
  0x21   : > { %p158_p2 = pnand %p530_p0, %p157_p1 }
  0x22   : > { %s814_s29 = sand.u32 (!%p158_p2), 1, %s694_s13  }
  0x23   : > { %161 = sbr.rel (%p158_p2) target bundleno = 620 (0x26c), region = 32  ;;  %s531_s30 = sshll.u32 (!%p158_p2), %s814_s29, 7 }
  0x24   : > { %s164_s4 = scalar_lea.sflag (!%p158_p2), [#allocation3], %s814_s29  ;;  %s167_s6 = scalar_lea.vmem (!%p158_p2), [#allocation2], %s531_s30 }
  0x28   : > { %681 = dma.done.wait (%p771_p6), %s164_s4, 2048  }
  0x29   : > { %683 = vsyncadd (%p771_p6), %s164_s4, 4294965248  ;;  %v824_v0 = vld [vmem:[%s167_s6] sm:$0xff]  ;;  %v826_v1 = vld [vmem:[%s167_s6 + $0x8] sm:$0xff]  ;;  %v255_v32 = vlaneseq  ;;  %vm260_vm0 = vcmask 130112   ;;  %vm264_vm1 = vcmask 195712   ;;  %vm268_vm2 = vcmask 261312  }
  0x2a   : > { %v828_v2 = vld [vmem:[%s167_s6 + $0x20] sm:$0xff]  ;;  %v207_v3 = vadd.f32 %v826_v1, %v824_v0  ;;  %v832_v4 = vld [vmem:[%s167_s6 + $0x28] sm:$0xff]  ;;  %v842_v9 = vld [vmem:[%s167_s6 + $0x10] sm:$0xff]  ;;  %vm272_vm3 = vcmask 326912   ;;  %vm276_vm4 = vcmask 392512   ;;  %vm280_vm5 = vcmask 458112  }
  0x2b   : > { %v834_v5 = vld [vmem:[%s167_s6 + $0x40] sm:$0xff]  ;;  %v836_v6 = vld [vmem:[%s167_s6 + $0x48] sm:$0xff]  ;;  %v213_v7 = vadd.f32 %v832_v4, %v828_v2  ;;  %v844_v10 = vld [vmem:[%s167_s6 + $0x18] sm:$0xff]  ;;  %v256_v36 = vand.u32 127, %v255_v32  ;;  %vm284_vm6 = vcmask 523712   ;;  %vm286_vm7 = vcmask 523264  }
  0x2c   : > { %v219_v8 = vadd.f32 %v836_v6, %v834_v5  ;;  %208 = vadd.xlane.f32.xlu0 %v207_v3  ;;  %v846_v11 = vld [vmem:[%s167_s6 + $0x30] sm:$0xff]  ;;  %v848_v12 = vld [vmem:[%s167_s6 + $0x38] sm:$0xff]  ;;  %v210_v15 = vadd.f32 %v844_v10, %v842_v9  ;;  %v860_v18 = vld [vmem:[%s167_s6 + $0x60] sm:$0xff]  ;;  %vm311_vm8 = vcmask 64512   ;;  %s903_s7 = scalar_lea.vmem [#allocation5], %s531_s30  ;;  %s542_s30 = sshll.u32 %s749_s16, 7 }
  0x2d   : > { %214 = vadd.xlane.f32.xlu1 %v213_v7  ;;  %v850_v13 = vld [vmem:[%s167_s6 + $0x50] sm:$0xff]  ;;  %v852_v14 = vld [vmem:[%s167_s6 + $0x58] sm:$0xff]  ;;  %v216_v16 = vadd.f32 %v848_v12, %v846_v11  ;;  %v862_v19 = vld [vmem:[%s167_s6 + $0x68] sm:$0xff]  ;;  %v258_v38 = vadd.s32 4294967288, %v256_v36  ;;  %v262_v39 = vadd.s32 4294967280, %v256_v36  ;;  %v266_v42 = vadd.s32 4294967272, %v256_v36  ;;  %s447_s10 = scalar_lea.hbm %s972_s3, %s542_s30 }
  0x2e   : > { %220 = vadd.xlane.f32.xlu2 %v219_v8  ;;  %v222_v17 = vadd.f32 %v852_v14, %v850_v13  ;;  %v864_v20 = vld [vmem:[%s167_s6 + $0x70] sm:$0xff]  ;;  %v866_v21 = vld [vmem:[%s167_s6 + $0x78] sm:$0xff]  ;;  %v225_v22 = vadd.f32 %v862_v19, %v860_v18  ;;  %v244_v26 = vld [vmem:[%s970_s1 + $0x28] sm:$0xff]  ;;  %v270_v46 = vadd.s32 4294967264, %v256_v36  ;;  %v274_v53 = vadd.s32 4294967256, %v256_v36  ;;  %s448_s11 = sshll.u32 %s903_s7, 4  ;;  %s449_s11 = int_to_ptr.vmem [resolvable:$true] %s448_s11 }
  0x2f   : > { %v228_v23 = vadd.f32 %v866_v21, %v864_v20  ;;  %v246_v24 = vld [vmem:[%s970_s1 + $0x38] sm:$0xff]  ;;  %v245_v25 = vld [vmem:[%s970_s1 + $0x30] sm:$0xff]  ;;  %v243_v27 = vld [vmem:[%s970_s1 + $0x20] sm:$0xff]  ;;  %v278_v59 = vadd.s32 4294967248, %v256_v36  ;;  %v282_v62 = vadd.s32 4294967240, %v256_v36  ;;  %s450_s17 = sshll.u32 %s447_s10, 4  ;;  %s451_s17 = int_to_ptr.hbm [resolvable:$true] %s450_s17 }
  0x30   : > { %297 = vmatpush.msra.mxu0 %v246_v24  ;;  %v242_v28 = vld [vmem:[%s970_s1 + $0x18] sm:$0xff]  ;;  %v241_v29 = vld [vmem:[%s970_s1 + $0x10] sm:$0xff]  ;;  %v240_v30 = vld [vmem:[%s970_s1 + $0x8] sm:$0xff]  ;;  %s436_s16 = scalar_lea.sflag [#allocation4], %s814_s29  ;;  %s650_s19 = sshra.s32 %s451_s17, 4  ;;  %s651_s19 = int_to_ptr.hbm [resolvable:$true] %s650_s19 }
  0x31   : > { %v239_v31 = vld [vmem:[%s970_s1] sm:$0xff]  ;;  %s652_s20 = scalar_lea.hbm %s651_s19, 128  ;;  %s656_s26 = scalar_lea.hbm %s972_s3, 256 }
  0x32   : > { %298 = vmatpush.msra.mxu0 %v245_v25  ;;  %v310_v24 = vld [vmem:[%s971_s2] sm:$0xff]  ;;  %p653_p6 = scmp.ne.s32.totalorder %s651_s19, %s652_s20  ;;  %p657_p0 = scmp.lt.s32.totalorder %s651_s19, %s972_s3 }
  0x33   : > { %330 = vmatpush.msra.mxu1 %v310_v24  ;;  %p658_p1 = scmp.lt.s32.totalorder %s656_s26, %s652_s20 }
  0x34   : > { %211 = vadd.xlane.f32.xlu0 %v210_v15  ;;  %299 = vmatpush.msra.mxu0 %v244_v26  ;;  %p654_p9 = pnand %p653_p6, %p778_p11 }
  0x35   : > { %217 = vadd.xlane.f32.xlu1 %v216_v16  ;;  %p659_p3 = por %p658_p1, %p657_p0 }
  0x36   : > { %223 = vadd.xlane.f32.xlu2 %v222_v17  ;;  %300 = vmatpush.msra.mxu0 %v243_v27  ;;  %v356_v27 = vshrl.u32 %v255_v32, 7  ;;  %p655_p13 = pneg %p654_p9 }
  0x38   : > { %301 = vmatpush.msra.mxu0 %v242_v28  ;;  %593 = vset.pattern.permute.xlu2 %v356_v27  ;;  %v369_v28 = vadd.s32 16, %v356_v27  ;;  %p660_p4 = pnand %p659_p3, %p655_p13 }
  0x3a   : > { %302 = vmatpush.msra.mxu0 %v241_v29  ;;  %v363_v29 = vadd.s32 8, %v356_v27  ;;  %595 = vset.pattern.permute.xlu1 %v369_v28 }
  0x3c   : > { %226 = vadd.xlane.f32.xlu0 %v225_v22  ;;  %303 = vmatpush.msra.mxu0 %v240_v30 }
  0x3d   : > { %229 = vadd.xlane.f32.xlu1 %v228_v23  ;;  %594 = vset.pattern.permute.xlu0 %v363_v29 }
  0x3e   : > { %304 = vmatpush.msra.mxu0 %v239_v31 }
  0x9f   : > { %v209_v33 = vpop.xlane.xlu0 %208 }
  0xa0   : > { %v215_v34 = vpop.xlane.xlu1 %214  ;;  %v231_v37 = vmul.f32 0.00390625, %v209_v33 }
  0xa1   : > { %v221_v35 = vpop.xlane.xlu2 %220  ;;  %v233_v40 = vmul.f32 0.00390625, %v215_v34 }
  0xa2   : > { %v257_v48 = vperm.slane %v231_v37, %v256_v36  ;;  %v235_v49 = vmul.f32 0.00390625, %v221_v35 }
  0xa3   : > { %v263_v51 = vperm.slane %v233_v40, %v262_v39 }
  0xa4   : > { %v271_v57 = vperm.slane %v235_v49, %v270_v46  ;;  %v375_v46 = vadd.s32 24, %v356_v27  ;;  %v393_v49 = vadd.s32 48, %v356_v27 }
  0xa7   : > { %v212_v41 = vpop.xlane.xlu0 %211 }
  0xa8   : > { %v232_v43 = vmul.f32 0.00390625, %v212_v41  ;;  %v218_v44 = vpop.xlane.xlu1 %217 }
  0xa9   : > { %v224_v45 = vpop.xlane.xlu2 %223  ;;  %v234_v47 = vmul.f32 0.00390625, %v218_v44 }
  0xaa   : > { %v259_v50 = vperm.slane %v232_v43, %v258_v38  ;;  %v236_v54 = vmul.f32 0.00390625, %v224_v45  ;;  %v387_v45 = vadd.s32 40, %v356_v27 }
  0xab   : > { %v267_v52 = vperm.slane %v234_v47, %v266_v42  ;;  %v399_v47 = vadd.s32 56, %v356_v27 }
  0xac   : > { %v261_v55 = vsel %vm260_vm0, %v259_v50, %v257_v48  ;;  %v275_v60 = vperm.slane %v236_v54, %v274_v53  ;;  %v381_v48 = vadd.s32 32, %v356_v27 }
  0xad   : > { %v265_v56 = vsel %vm264_vm1, %v263_v51, %v261_v55 }
  0xae   : > { %v269_v58 = vsel %vm268_vm2, %v267_v52, %v265_v56 }
  0xaf   : > { %v227_v61 = vpop.xlane.xlu0 %226  ;;  %v273_v7 = vsel %vm272_vm3, %v271_v57, %v269_v58 }
  0xb0   : > { %v237_v63 = vmul.f32 0.00390625, %v227_v61  ;;  %v230_v3 = vpop.xlane.xlu1 %229  ;;  %v277_v17 = vsel %vm276_vm4, %v275_v60, %v273_v7 }
  0xb1   : > { %v238_v8 = vmul.f32 0.00390625, %v230_v3 }
  0xb2   : > { %v279_v15 = vperm.slane %v237_v63, %v278_v59 }
  0xb3   : > { %v283_v16 = vperm.slane %v238_v8, %v282_v62 }
  0xb4   : > { %v281_v22 = vsel %vm280_vm5, %v279_v15, %v277_v17 }
  0xb5   : > { %v285_v23 = vsel %vm284_vm6, %v283_v16, %v281_v22 }
  0xb6   : > { %533 = vmatmul.msk.f32.vlgmr.msra.gmra.mxu0 %vm286_vm7, %v285_v23 }
 0x133   : > { %v306_v25 = vpop.f32.mrf.mxu0 }
 0x134   : > { %v309_v26 = vmax.f32 %v306_v25, 0.0 }
 0x136   : > { %534 = vmatmul.msk.f32.vlgmr.msra.gmra.mxu1 %vm311_vm8, %v309_v26 }
 0x1b3   : > { %v332_v30 = vpop.f32.mrf.mxu1 }
 0x1b4   : > { %v535_v31 = vmul.f32 -1.442695, %v332_v30 }
 0x1b6   : > { %602 = vpow2.f32 %v535_v31 }
 0x1bc   : > { %v603_v33 = vpop.eup %602 }
 0x1bd   : > { %v338_v34 = vadd.f32 1.0, %v603_v33 }
 0x1bf   : > { %604 = vrcp.f32 %v338_v34  ;;  %v350_v38 = vand.u32 2147483648, %v338_v34  ;;  %v348_v40 = vand.u32 2147483647, %v338_v34  ;;  %vm344_vm10 = vweird.f32 %v338_v34 }
 0x1c1   : > { %v351_v32 = vor.u32 1.1754944e-38, %v350_v38  ;;  %vm349_vm12 = vcmp.eq.f32.partialorder %v348_v40, 8.507059e+37 }
 0x1c5   : > { %v605_v35 = vpop.eup %604 }
 0x1c6   : > { %v340_v36 = vmul.f32 %v605_v35, %v338_v34  ;;  %vm345_vm9 = vweird.f32 %v605_v35 }
 0x1c7   : > { %vm346_vm11 = vmor %vm344_vm10, %vm345_vm9 }
 0x1c8   : > { %v341_v37 = vsub.f32 1.0, %v340_v36 }
 0x1ca   : > { %v342_v39 = vmul.f32 %v605_v35, %v341_v37 }
 0x1cc   : > { %v343_v41 = vadd.f32 %v605_v35, %v342_v39 }
 0x1ce   : > { %v347_v42 = vsel %vm346_vm11, %v605_v35, %v343_v41 }
 0x1cf   : > { %v352_v43 = vsel %vm349_vm12, %v351_v32, %v347_v42 }
 0x1d0   : > { %v354_v44 = vperm.slane %v352_v43, 0 }
 0x1d2   : > { %371 = vperm.xlu1 %595, %v354_v44   ;;  %365 = vperm.xlu0 %594, %v354_v44  }
 0x1d3   : > { %359 = vperm.xlu2 %593, %v354_v44  }
 0x1da   : > { %598 = vset.pattern.permute.xlu1 %v387_v45  ;;  %601 = vset.pattern.permute.xlu0 %v399_v47 }
 0x1db   : > { %596 = vset.pattern.permute.xlu2 %v375_v46 }
 0x1e2   : > { %389 = vperm.xlu1 %598, %v354_v44  }
 0x1e3   : > { %377 = vperm.xlu2 %596, %v354_v44  }
 0x1ea   : > { %600 = vset.pattern.permute.xlu1 %v399_v47 }
 0x1eb   : > { %597 = vset.pattern.permute.xlu2 %v381_v48 }
 0x1f2   : > { %401 = vperm.xlu1 %600, %v354_v44  }
 0x1f3   : > { %383 = vperm.xlu2 %597, %v354_v44  }
 0x1fb   : > { %599 = vset.pattern.permute.xlu2 %v393_v49 }
 0x203   : > { %395 = vperm.xlu2 %599, %v354_v44  }
 0x22d   : > { %v360_v50 = vpop.permute.xlu2 %359 }
 0x22e   : > { %v403_v51 = vmul.f32 %v360_v50, %v824_v0  ;;  %v404_v52 = vmul.f32 %v360_v50, %v826_v1 }
 0x230   : > { %419 = vst [vmem:[%s903_s7] sm:$0xff] %v403_v51 }
 0x231   : > { %420 = vst [vmem:[%s903_s7 + $0x8] sm:$0xff] %v404_v52 }
 0x23d   : > { %v378_v53 = vpop.permute.xlu2 %377 }
 0x23e   : > { %v409_v54 = vmul.f32 %v378_v53, %v846_v11  ;;  %v410_v0 = vmul.f32 %v378_v53, %v848_v12 }
 0x240   : > { %425 = vst [vmem:[%s903_s7 + $0x30] sm:$0xff] %v409_v54 }
 0x241   : > { %426 = vst [vmem:[%s903_s7 + $0x38] sm:$0xff] %v410_v0 }
 0x244   : > { %v372_v1 = vpop.permute.xlu1 %371  ;;  %v366_v55 = vpop.permute.xlu0 %365 }
 0x245   : > { %v407_v56 = vmul.f32 %v372_v1, %v828_v2  ;;  %v408_v57 = vmul.f32 %v372_v1, %v832_v4  ;;  %v405_v58 = vmul.f32 %v366_v55, %v842_v9  ;;  %v406_v59 = vmul.f32 %v366_v55, %v844_v10 }
 0x247   : > { %423 = vst [vmem:[%s903_s7 + $0x20] sm:$0xff] %v407_v56 }
 0x248   : > { %424 = vst [vmem:[%s903_s7 + $0x28] sm:$0xff] %v408_v57 }
 0x249   : > { %421 = vst [vmem:[%s903_s7 + $0x10] sm:$0xff] %v405_v58 }
 0x24a   : > { %422 = vst [vmem:[%s903_s7 + $0x18] sm:$0xff] %v406_v59 }
 0x24d   : > { %v384_v11 = vpop.permute.xlu2 %383 }
 0x24e   : > { %v411_v12 = vmul.f32 %v384_v11, %v834_v5  ;;  %v412_v2 = vmul.f32 %v384_v11, %v836_v6 }
 0x250   : > { %427 = vst [vmem:[%s903_s7 + $0x40] sm:$0xff] %v411_v12 }
 0x251   : > { %428 = vst [vmem:[%s903_s7 + $0x48] sm:$0xff] %v412_v2 }
 0x254   : > { %v390_v4 = vpop.permute.xlu1 %389 }
 0x255   : > { %v413_v9 = vmul.f32 %v390_v4, %v850_v13  ;;  %v414_v60 = vmul.f32 %v390_v4, %v852_v14 }
 0x257   : > { %429 = vst [vmem:[%s903_s7 + $0x50] sm:$0xff] %v413_v9 }
 0x258   : > { %430 = vst [vmem:[%s903_s7 + $0x58] sm:$0xff] %v414_v60 }
 0x25d   : > { %v396_v10 = vpop.permute.xlu2 %395 }
 0x25e   : > { %v415_v61 = vmul.f32 %v396_v10, %v860_v18  ;;  %v416_v5 = vmul.f32 %v396_v10, %v862_v19 }
 0x260   : > { %431 = vst [vmem:[%s903_s7 + $0x60] sm:$0xff] %v415_v61 }
 0x261   : > { %432 = vst [vmem:[%s903_s7 + $0x68] sm:$0xff] %v416_v5 }
 0x264   : > { %v402_v6 = vpop.permute.xlu1 %401 }
 0x265   : > { %v417_v13 = vmul.f32 %v402_v6, %v864_v20  ;;  %v418_v14 = vmul.f32 %v402_v6, %v866_v21 }
 0x267   : > { %433 = vst [vmem:[%s903_s7 + $0x70] sm:$0xff] %v417_v13 }
 0x268   : > { %434 = vst [vmem:[%s903_s7 + $0x78] sm:$0xff] %v418_v14 }
 0x269   : > { %663 = shalt.err (!%p660_p4)
}
 0x26a   : > { %s706_s29 = smov 256   ;;  %s707_s6 = smov 16  }
 0x26b   : > { %545 = dma.vmem_to_hbm [thread:$0]  (%p778_p11), %s449_s11, 2048, %s451_s17, %s436_s16, %s706_s29, %s706_s29, %s707_s6  }
 0x26c PF: > { %s465_s23 = sand.u32 1, %s690_s12   ;;  %p978_p7 = scmp.ge.s32.totalorder %s702_s15, 2 }
 0x26d   : > { %s466_s5 = scalar_lea.sflag [#allocation4], %s465_s23 }
 0x26e   : > { %p552_p5 = pnand %p978_p7, %p782_p12 }
 0x270   : > { %p553_p8 = pneg %p552_p5 }
 0x272   : > { %685 = dma.done.wait (%p553_p8), %s466_s5, 2048  }
 0x273   : > { %687 = vsyncadd (%p553_p8), %s466_s5, 4294965248  ;;  %p16_p10 = scmp.ge.s32.totalorder %s753_s18, 4   ;;  %s979_s12 = smov %s694_s13 }
 0x274   : > { %s980_s13 = smov %s698_s14  ;;  %s981_s14 = smov %s765_s21 }
 0x275   : > { %s982_s15 = smov %s753_s18  ;;  %18 = sbr.rel (!%p16_p10) target bundleno = 5 (0x5), region = 77 }
 0x27a   :  { %472 = vsyncpa [#allocation3], 1 }
 0x27b   :  { %474 = vsyncpa [#allocation3 + $0x1], 1 }
 0x27c   :  { %475 = vsyncpa [#allocation4], 1 }
 0x27d   :  { %477 = vsyncpa [#allocation4 + $0x1], 1 }

</bundles_post_ra>
